<compile_context>
chip_gen: v7x
topology: tpu7x:2x2x1
jax: 0.10.0
libtpu: 0.0.40
codegen_flags: <defaults>
</compile_context>

<pallas_src>
import math

import jax
import jax.numpy as jnp
from jax.experimental import pallas as pl
from jax.experimental.pallas import tpu as pltpu


def _pick_t_chunk(T, cap=64):
    """Largest chunk <= cap that divides T (keeps the grid mask-free)."""
    if T <= cap:
        return T
    for c in range(cap, 0, -1):
        if T % c == 0:
            return c
    return 1


def _make_kernel(t_chunk, b_shard, D, H):
    H4 = 4 * H
    TBC = t_chunk * b_shard
    unroll = min(t_chunk, 8)

    def kernel(x_ref, w_ih_ref, w_hh_ref, b_ref, fcw_ref, fcb_ref,
               out_ref, xg_ref, h_ref, c_ref):
        t_idx = pl.program_id(1)
        n_t = pl.num_programs(1)

        # Reset the recurrent state at the start of each batch shard's sweep.
        @pl.when(t_idx == 0)
        def _():
            h_ref[...] = jnp.zeros_like(h_ref)
            c_ref[...] = jnp.zeros_like(c_ref)

        # (1) One MXU pass for the whole chunk's input projection:
        #     xg[t*b_shard + b, :] = x[t, b, :] @ W_ih^T + (b_ih + b_hh)
        #     (g-gate lanes arrive pre-scaled by 2 from the wrapper).
        x2d = x_ref[...].reshape(TBC, D)
        xg_ref[...] = (
            jnp.dot(x2d, w_ih_ref[...], preferred_element_type=jnp.float32)
            + b_ref[...])

        # (2) Hoist loop invariants.
        w_hh = w_hh_ref[...]                                   # (H, 4H)

        # (3) Serial LSTM recurrence; h/c carried in vregs across iterations.
        def step(tt, carry):
            h, c = carry
            row0 = pl.multiple_of(tt * b_shard, 8)             # aligned sublane start
            xg_t = xg_ref[pl.ds(row0, b_shard), :]             # (b_shard, 4H)
            gates = xg_t + jnp.dot(h, w_hh, preferred_element_type=jnp.float32)
            # Single EUP pass over the full gates vector; g gate recovered via
            # tanh(z) = 2*sigmoid(2z) - 1 (weights pre-scaled).
            s = jax.nn.sigmoid(gates)
            i_g = s[:, 0 * H:1 * H]
            f_g = s[:, 1 * H:2 * H]
            g_g = 2.0 * s[:, 2 * H:3 * H] - 1.0
            o_g = s[:, 3 * H:4 * H]
            c_new = f_g * c + i_g * g_g
            h_new = o_g * jnp.tanh(c_new)
            return (h_new, c_new)

        h_T, c_T = jax.lax.fori_loop(0, t_chunk, step,
                                     (h_ref[...], c_ref[...]), unroll=unroll)
        h_ref[...] = h_T
        c_ref[...] = c_T

        # (4) Final Linear on the last hidden state, only at the last chunk.
        @pl.when(t_idx == n_t - 1)
        def _():
            out_ref[...] = (
                jnp.dot(h_T, fcw_ref[...], preferred_element_type=jnp.float32)
                + fcb_ref[...])

    return kernel


def informer_module(x, params, *, matmul_dtype=jnp.float32, t_chunk_cap=64):
    """x: (B, T, D) float32. Returns (B, 1) float32.

    matmul_dtype only affects the operands of the big batched input-projection
    matmul (recurrence / state / gate math stay float32 — required on v5e).
    """
    w_ih, w_hh, b_ih, b_hh, fc_w, fc_b = (
        params["w_ih"], params["w_hh"], params["b_ih"], params["b_hh"],
        params["fc_w"], params["fc_b"])
    B, T, D = x.shape
    assert T >= 1, "sequence length must be >= 1"
    H4 = w_ih.shape[0]
    H = H4 // 4

    # Batch padding / sharding (multiples of 8 sublanes).
    B_pad = ((B + 7) // 8) * 8
    b_shard = math.gcd(B_pad, 64)
    n_b = B_pad // b_shard
    t_chunk = _pick_t_chunk(T, t_chunk_cap)
    n_t = T // t_chunk

    # Pre-scale the g-gate (tanh) columns/lanes by 2 so the kernel needs only
    # ONE sigmoid per step: tanh(z) = 2*sigmoid(2z) - 1. Weight-only, tiny.
    g_scale = jnp.ones((H4,), jnp.float32).at[2 * H:3 * H].set(2.0)

    # Time-major, batch-padded input: (T, B_pad, D).
    # TODO(synk): fold this transpose/pad into the kernel's DMA pipeline.
    x_p = jnp.pad(x, ((0, B_pad - B), (0, 0), (0, 0)))
    x_tm = jnp.transpose(x_p, (1, 0, 2)).astype(matmul_dtype)

    w_ih_t = (jnp.transpose(w_ih) * g_scale).astype(matmul_dtype)   # (D, 4H)
    w_hh_t = (jnp.transpose(w_hh) * g_scale).astype(jnp.float32)    # (H, 4H)
    b = ((b_ih + b_hh) * g_scale).reshape(1, H4).astype(jnp.float32)
    fc_w_t = jnp.transpose(fc_w).astype(jnp.float32)                # (H, 1)
    fc_b2 = fc_b.reshape(1, 1).astype(jnp.float32)                  # (1, 1)

    kernel = _make_kernel(t_chunk, b_shard, D, H)
    const2 = lambda bi, ti: (0, 0)

    out = pl.pallas_call(
        kernel,
        out_shape=jax.ShapeDtypeStruct((B_pad, 1), jnp.float32),
        grid_spec=pltpu.PrefetchScalarGridSpec(
            num_scalar_prefetch=0,
            grid=(n_b, n_t),
            in_specs=[
                pl.BlockSpec((t_chunk, b_shard, D), lambda bi, ti: (ti, bi, 0)),
                pl.BlockSpec((D, H4), const2),
                pl.BlockSpec((H, H4), const2),
                pl.BlockSpec((1, H4), const2),
                pl.BlockSpec((H, 1), const2),
                pl.BlockSpec((1, 1), const2),
            ],
            out_specs=pl.BlockSpec((b_shard, 1), lambda bi, ti: (bi, 0)),
            scratch_shapes=[
                pltpu.VMEM((t_chunk * b_shard, H4), jnp.float32),  # xg chunk
                pltpu.VMEM((b_shard, H), jnp.float32),             # h carry
                pltpu.VMEM((b_shard, H), jnp.float32),             # c carry
            ],
        ),
        compiler_params=pltpu.CompilerParams(
            dimension_semantics=("parallel", "arbitrary")),
    )(x_tm, w_ih_t, w_hh_t, b, fc_w_t, fc_b2)
    return out[:B]


def _reference(x, params):
    """Pure-JAX reference matching torch.nn.LSTM + Linear semantics."""
    w_ih, w_hh, b_ih, b_hh, fc_w, fc_b = (
        params["w_ih"], params["w_hh"], params["b_ih"], params["b_hh"],
        params["fc_w"], params["fc_b"])
    B, T, D = x.shape
    H = w_hh.shape[1]

    def step(carry, x_t):
        h, c = carry
        gates = x_t @ w_ih.T + h @ w_hh.T + b_ih + b_hh
        i = jax.nn.sigmoid(gates[:, 0 * H:1 * H])
        f = jax.nn.sigmoid(gates[:, 1 * H:2 * H])
        g = jnp.tanh(gates[:, 2 * H:3 * H])
        o = jax.nn.sigmoid(gates[:, 3 * H:4 * H])
        c = f * c + i * g
        h = o * jnp.tanh(c)
        return (h, c), None

    h0 = jnp.zeros((B, H), jnp.float32)
    c0 = jnp.zeros((B, H), jnp.float32)
    (h_T, _), _ = jax.lax.scan(step, (h0, c0), jnp.transpose(x, (1, 0, 2)))
    return h_T @ fc_w.T + fc_b


if __name__ == "__main__":
    B, T, D, H = 2, 8, 16, 32   # batch, seq_len, input_dim, output_dim(hidden)

    key = jax.random.PRNGKey(0)
    ks = jax.random.split(key, 7)
    bound = 1.0 / (H ** 0.5)    # PyTorch-style uniform init range
    params = {
        "w_ih": jax.random.uniform(ks[0], (4 * H, D), jnp.float32, -bound, bound),
        "w_hh": jax.random.uniform(ks[1], (4 * H, H), jnp.float32, -bound, bound),
        "b_ih": jax.random.uniform(ks[2], (4 * H,), jnp.float32, -bound, bound),
        "b_hh": jax.random.uniform(ks[3], (4 * H,), jnp.float32, -bound, bound),
        "fc_w": jax.random.uniform(ks[4], (1, H), jnp.float32, -bound, bound),
        "fc_b": jax.random.uniform(ks[5], (1,), jnp.float32, -bound, bound),
    }
    x = jax.random.normal(ks[6], (B, T, D), jnp.float32)

    out = jax.block_until_ready(informer_module(x, params))
    ref = jax.block_until_ready(_reference(x, params))

    assert out.shape == (B, 1), out.shape
    assert jnp.allclose(out, ref, atol=1e-4, rtol=1e-4), (out, ref)
    print("KERNEL_OK")
</pallas_src>

<mosaic_0001>
module attributes {stable_mosaic.version = 11 : i64} {
  func.func @kernel(%arg0: i32, %arg1: i32, %arg2: memref<8x8x16xf32, #tpu.memory_space<vmem>>, %arg3: memref<16x128xf32, #tpu.memory_space<vmem>>, %arg4: memref<32x128xf32, #tpu.memory_space<vmem>>, %arg5: memref<1x128xf32, #tpu.memory_space<vmem>>, %arg6: memref<32x1xf32, #tpu.memory_space<vmem>>, %arg7: memref<1x1xf32, #tpu.memory_space<vmem>>, %arg8: memref<8x1xf32, #tpu.memory_space<vmem>>, %arg9: memref<64x128xf32, #tpu.memory_space<vmem>>, %arg10: memref<8x32xf32, #tpu.memory_space<vmem>>, %arg11: memref<8x32xf32, #tpu.memory_space<vmem>>) attributes {dimension_semantics = [#tpu.dimension_semantics<parallel>, #tpu.dimension_semantics<arbitrary>], iteration_bounds = array<i64: 1, 1>, scalar_prefetch = 0 : i64, scratch_operands = 3 : i64, tpu.core_type = #tpu.core_type<tc>, window_params = [{transform_indices = @transform_0, window_bounds = array<i64: 8, 8, 16>}, {pipeline_mode = #tpu.pipeline_mode<synchronous>, transform_indices = @transform_1, window_bounds = array<i64: 16, 128>}, {pipeline_mode = #tpu.pipeline_mode<synchronous>, transform_indices = @transform_2, window_bounds = array<i64: 32, 128>}, {pipeline_mode = #tpu.pipeline_mode<synchronous>, transform_indices = @transform_3, window_bounds = array<i64: 1, 128>}, {pipeline_mode = #tpu.pipeline_mode<synchronous>, transform_indices = @transform_4, window_bounds = array<i64: 32, 1>}, {pipeline_mode = #tpu.pipeline_mode<synchronous>, transform_indices = @transform_5, window_bounds = array<i64: 1, 1>}, {transform_indices = @transform_6, window_bounds = array<i64: 8, 1>}]} {
    %c0_i32 = arith.constant 0 : i32
    %0 = arith.cmpi eq, %arg1, %c0_i32 : i32
    %1 = arith.extui %0 : i1 to i32
    %c0_i32_0 = arith.constant 0 : i32
    %2 = arith.cmpi ne, %1, %c0_i32_0 : i32
    scf.if %2 {
      %cst_70 = arith.constant 0.000000e+00 : f32
      %211 = vector.broadcast %cst_70 : f32 to vector<8x32xf32>
      %c0_71 = arith.constant 0 : index
      %c0_72 = arith.constant 0 : index
      %212 = vector.load %arg10[%c0_71, %c0_72] : memref<8x32xf32, #tpu.memory_space<vmem>>, vector<8x32xf32>
      tpu.vector_store %arg10[%c0_71, %c0_72], %211 {strides = array<i32>} : memref<8x32xf32, #tpu.memory_space<vmem>>, vector<8x32xf32>,
      %cst_73 = arith.constant 0.000000e+00 : f32
      %213 = vector.broadcast %cst_73 : f32 to vector<8x32xf32>
      %c0_74 = arith.constant 0 : index
      %c0_75 = arith.constant 0 : index
      %214 = vector.load %arg11[%c0_74, %c0_75] : memref<8x32xf32, #tpu.memory_space<vmem>>, vector<8x32xf32>
      tpu.vector_store %arg11[%c0_74, %c0_75], %213 {strides = array<i32>} : memref<8x32xf32, #tpu.memory_space<vmem>>, vector<8x32xf32>,
    } else {
    }
    %c0 = arith.constant 0 : index
    %c0_1 = arith.constant 0 : index
    %c0_2 = arith.constant 0 : index
    %3 = vector.load %arg2[%c0, %c0_1, %c0_2] : memref<8x8x16xf32, #tpu.memory_space<vmem>>, vector<8x8x16xf32>
    %4 = vector.shape_cast %3 : vector<8x8x16xf32> to vector<64x16xf32>
    %c0_3 = arith.constant 0 : index
    %c0_4 = arith.constant 0 : index
    %5 = vector.load %arg3[%c0_3, %c0_4] : memref<16x128xf32, #tpu.memory_space<vmem>>, vector<16x128xf32>
    %cst = arith.constant dense<0.000000e+00> : vector<64x128xf32>
    %6 = tpu.matmul %4, %5, %cst {dimension_numbers = #tpu.dot_dimension_numbers<[1], [0], [0], [1], [0, 0, 1, 1], [], []>} : vector<64x16xf32>, vector<16x128xf32>, vector<64x128xf32> -> vector<64x128xf32>
    %c0_5 = arith.constant 0 : index
    %c0_6 = arith.constant 0 : index
    %7 = vector.load %arg5[%c0_5, %c0_6] : memref<1x128xf32, #tpu.memory_space<vmem>>, vector<1x128xf32>
    %8 = vector.broadcast %7 : vector<1x128xf32> to vector<64x128xf32>
    %9 = arith.addf %6, %8 : vector<64x128xf32>
    %c0_7 = arith.constant 0 : index
    %c0_8 = arith.constant 0 : index
    %10 = vector.load %arg9[%c0_7, %c0_8] : memref<64x128xf32, #tpu.memory_space<vmem>>, vector<64x128xf32>
    tpu.vector_store %arg9[%c0_7, %c0_8], %9 {strides = array<i32>} : memref<64x128xf32, #tpu.memory_space<vmem>>, vector<64x128xf32>,
    %c0_9 = arith.constant 0 : index
    %c0_10 = arith.constant 0 : index
    %11 = vector.load %arg4[%c0_9, %c0_10] : memref<32x128xf32, #tpu.memory_space<vmem>>, vector<32x128xf32>
    %c0_11 = arith.constant 0 : index
    %c0_12 = arith.constant 0 : index
    %12 = vector.load %arg10[%c0_11, %c0_12] : memref<8x32xf32, #tpu.memory_space<vmem>>, vector<8x32xf32>
    %c0_13 = arith.constant 0 : index
    %c0_14 = arith.constant 0 : index
    %13 = vector.load %arg11[%c0_13, %c0_14] : memref<8x32xf32, #tpu.memory_space<vmem>>, vector<8x32xf32>
    %c0_i32_15 = arith.constant 0 : i32
    %c8_i32 = arith.constant 8 : i32
    %14 = arith.muli %c0_i32_15, %c8_i32 : i32
    %15 = tpu.assume_multiple %14, 8 : i32
    %16 = arith.index_cast %15 : i32 to index
    %c0_16 = arith.constant 0 : index
    %17 = vector.load %arg9[%16, %c0_16] : memref<64x128xf32, #tpu.memory_space<vmem>>, vector<8x128xf32>
    %cst_17 = arith.constant dense<0.000000e+00> : vector<8x128xf32>
    %18 = tpu.matmul %12, %11, %cst_17 {dimension_numbers = #tpu.dot_dimension_numbers<[1], [0], [0], [1], [0, 0, 1, 1], [], []>} : vector<8x32xf32>, vector<32x128xf32>, vector<8x128xf32> -> vector<8x128xf32>
    %19 = arith.addf %17, %18 : vector<8x128xf32>
    %20 = arith.negf %19 : vector<8x128xf32>
    %21 = math.exp %20 : vector<8x128xf32>
    %cst_18 = arith.constant 1.000000e+00 : f32
    %22 = vector.broadcast %cst_18 : f32 to vector<8x128xf32>
    %23 = arith.addf %22, %21 : vector<8x128xf32>
    %24 = arith.divf %22, %23 : vector<8x128xf32>
    %25 = vector.extract_strided_slice %24 {offsets = [0, 0], sizes = [8, 32], strides = [1, 1]} : vector<8x128xf32> to vector<8x32xf32>
    %26 = vector.extract_strided_slice %24 {offsets = [0, 32], sizes = [8, 32], strides = [1, 1]} : vector<8x128xf32> to vector<8x32xf32>
    %27 = vector.extract_strided_slice %24 {offsets = [0, 64], sizes = [8, 32], strides = [1, 1]} : vector<8x128xf32> to vector<8x32xf32>
    %cst_19 = arith.constant 2.000000e+00 : f32
    %28 = vector.broadcast %cst_19 : f32 to vector<8x32xf32>
    %29 = arith.mulf %28, %27 : vector<8x32xf32>
    %cst_20 = arith.constant 1.000000e+00 : f32
    %30 = vector.broadcast %cst_20 : f32 to vector<8x32xf32>
    %31 = arith.subf %29, %30 : vector<8x32xf32>
    %32 = vector.extract_strided_slice %24 {offsets = [0, 96], sizes = [8, 32], strides = [1, 1]} : vector<8x128xf32> to vector<8x32xf32>
    %33 = arith.mulf %26, %13 : vector<8x32xf32>
    %34 = arith.mulf %25, %31 : vector<8x32xf32>
    %35 = arith.addf %33, %34 : vector<8x32xf32>
    %36 = math.tanh %35 : vector<8x32xf32>
    %37 = arith.mulf %32, %36 : vector<8x32xf32>
    %c1_i32 = arith.constant 1 : i32
    %c8_i32_21 = arith.constant 8 : i32
    %38 = arith.muli %c1_i32, %c8_i32_21 : i32
    %39 = tpu.assume_multiple %38, 8 : i32
    %40 = arith.index_cast %39 : i32 to index
    %c0_22 = arith.constant 0 : index
    %41 = vector.load %arg9[%40, %c0_22] : memref<64x128xf32, #tpu.memory_space<vmem>>, vector<8x128xf32>
    %cst_23 = arith.constant dense<0.000000e+00> : vector<8x128xf32>
    %42 = tpu.matmul %37, %11, %cst_23 {dimension_numbers = #tpu.dot_dimension_numbers<[1], [0], [0], [1], [0, 0, 1, 1], [], []>} : vector<8x32xf32>, vector<32x128xf32>, vector<8x128xf32> -> vector<8x128xf32>
    %43 = arith.addf %41, %42 : vector<8x128xf32>
    %44 = arith.negf %43 : vector<8x128xf32>
    %45 = math.exp %44 : vector<8x128xf32>
    %cst_24 = arith.constant 1.000000e+00 : f32
    %46 = vector.broadcast %cst_24 : f32 to vector<8x128xf32>
    %47 = arith.addf %46, %45 : vector<8x128xf32>
    %48 = arith.divf %46, %47 : vector<8x128xf32>
    %49 = vector.extract_strided_slice %48 {offsets = [0, 0], sizes = [8, 32], strides = [1, 1]} : vector<8x128xf32> to vector<8x32xf32>
    %50 = vector.extract_strided_slice %48 {offsets = [0, 32], sizes = [8, 32], strides = [1, 1]} : vector<8x128xf32> to vector<8x32xf32>
    %51 = vector.extract_strided_slice %48 {offsets = [0, 64], sizes = [8, 32], strides = [1, 1]} : vector<8x128xf32> to vector<8x32xf32>
    %cst_25 = arith.constant 2.000000e+00 : f32
    %52 = vector.broadcast %cst_25 : f32 to vector<8x32xf32>
    %53 = arith.mulf %52, %51 : vector<8x32xf32>
    %cst_26 = arith.constant 1.000000e+00 : f32
    %54 = vector.broadcast %cst_26 : f32 to vector<8x32xf32>
    %55 = arith.subf %53, %54 : vector<8x32xf32>
    %56 = vector.extract_strided_slice %48 {offsets = [0, 96], sizes = [8, 32], strides = [1, 1]} : vector<8x128xf32> to vector<8x32xf32>
    %57 = arith.mulf %50, %35 : vector<8x32xf32>
    %58 = arith.mulf %49, %55 : vector<8x32xf32>
    %59 = arith.addf %57, %58 : vector<8x32xf32>
    %60 = math.tanh %59 : vector<8x32xf32>
    %61 = arith.mulf %56, %60 : vector<8x32xf32>
    %c2_i32 = arith.constant 2 : i32
    %c8_i32_27 = arith.constant 8 : i32
    %62 = arith.muli %c2_i32, %c8_i32_27 : i32
    %63 = tpu.assume_multiple %62, 8 : i32
    %64 = arith.index_cast %63 : i32 to index
    %c0_28 = arith.constant 0 : index
    %65 = vector.load %arg9[%64, %c0_28] : memref<64x128xf32, #tpu.memory_space<vmem>>, vector<8x128xf32>
    %cst_29 = arith.constant dense<0.000000e+00> : vector<8x128xf32>
    %66 = tpu.matmul %61, %11, %cst_29 {dimension_numbers = #tpu.dot_dimension_numbers<[1], [0], [0], [1], [0, 0, 1, 1], [], []>} : vector<8x32xf32>, vector<32x128xf32>, vector<8x128xf32> -> vector<8x128xf32>
    %67 = arith.addf %65, %66 : vector<8x128xf32>
    %68 = arith.negf %67 : vector<8x128xf32>
    %69 = math.exp %68 : vector<8x128xf32>
    %cst_30 = arith.constant 1.000000e+00 : f32
    %70 = vector.broadcast %cst_30 : f32 to vector<8x128xf32>
    %71 = arith.addf %70, %69 : vector<8x128xf32>
    %72 = arith.divf %70, %71 : vector<8x128xf32>
    %73 = vector.extract_strided_slice %72 {offsets = [0, 0], sizes = [8, 32], strides = [1, 1]} : vector<8x128xf32> to vector<8x32xf32>
    %74 = vector.extract_strided_slice %72 {offsets = [0, 32], sizes = [8, 32], strides = [1, 1]} : vector<8x128xf32> to vector<8x32xf32>
    %75 = vector.extract_strided_slice %72 {offsets = [0, 64], sizes = [8, 32], strides = [1, 1]} : vector<8x128xf32> to vector<8x32xf32>
    %cst_31 = arith.constant 2.000000e+00 : f32
    %76 = vector.broadcast %cst_31 : f32 to vector<8x32xf32>
    %77 = arith.mulf %76, %75 : vector<8x32xf32>
    %cst_32 = arith.constant 1.000000e+00 : f32
    %78 = vector.broadcast %cst_32 : f32 to vector<8x32xf32>
    %79 = arith.subf %77, %78 : vector<8x32xf32>
    %80 = vector.extract_strided_slice %72 {offsets = [0, 96], sizes = [8, 32], strides = [1, 1]} : vector<8x128xf32> to vector<8x32xf32>
    %81 = arith.mulf %74, %59 : vector<8x32xf32>
    %82 = arith.mulf %73, %79 : vector<8x32xf32>
    %83 = arith.addf %81, %82 : vector<8x32xf32>
    %84 = math.tanh %83 : vector<8x32xf32>
    %85 = arith.mulf %80, %84 : vector<8x32xf32>
    %c3_i32 = arith.constant 3 : i32
    %c8_i32_33 = arith.constant 8 : i32
    %86 = arith.muli %c3_i32, %c8_i32_33 : i32
    %87 = tpu.assume_multiple %86, 8 : i32
    %88 = arith.index_cast %87 : i32 to index
    %c0_34 = arith.constant 0 : index
    %89 = vector.load %arg9[%88, %c0_34] : memref<64x128xf32, #tpu.memory_space<vmem>>, vector<8x128xf32>
    %cst_35 = arith.constant dense<0.000000e+00> : vector<8x128xf32>
    %90 = tpu.matmul %85, %11, %cst_35 {dimension_numbers = #tpu.dot_dimension_numbers<[1], [0], [0], [1], [0, 0, 1, 1], [], []>} : vector<8x32xf32>, vector<32x128xf32>, vector<8x128xf32> -> vector<8x128xf32>
    %91 = arith.addf %89, %90 : vector<8x128xf32>
    %92 = arith.negf %91 : vector<8x128xf32>
    %93 = math.exp %92 : vector<8x128xf32>
    %cst_36 = arith.constant 1.000000e+00 : f32
    %94 = vector.broadcast %cst_36 : f32 to vector<8x128xf32>
    %95 = arith.addf %94, %93 : vector<8x128xf32>
    %96 = arith.divf %94, %95 : vector<8x128xf32>
    %97 = vector.extract_strided_slice %96 {offsets = [0, 0], sizes = [8, 32], strides = [1, 1]} : vector<8x128xf32> to vector<8x32xf32>
    %98 = vector.extract_strided_slice %96 {offsets = [0, 32], sizes = [8, 32], strides = [1, 1]} : vector<8x128xf32> to vector<8x32xf32>
    %99 = vector.extract_strided_slice %96 {offsets = [0, 64], sizes = [8, 32], strides = [1, 1]} : vector<8x128xf32> to vector<8x32xf32>
    %cst_37 = arith.constant 2.000000e+00 : f32
    %100 = vector.broadcast %cst_37 : f32 to vector<8x32xf32>
    %101 = arith.mulf %100, %99 : vector<8x32xf32>
    %cst_38 = arith.constant 1.000000e+00 : f32
    %102 = vector.broadcast %cst_38 : f32 to vector<8x32xf32>
    %103 = arith.subf %101, %102 : vector<8x32xf32>
    %104 = vector.extract_strided_slice %96 {offsets = [0, 96], sizes = [8, 32], strides = [1, 1]} : vector<8x128xf32> to vector<8x32xf32>
    %105 = arith.mulf %98, %83 : vector<8x32xf32>
    %106 = arith.mulf %97, %103 : vector<8x32xf32>
    %107 = arith.addf %105, %106 : vector<8x32xf32>
    %108 = math.tanh %107 : vector<8x32xf32>
    %109 = arith.mulf %104, %108 : vector<8x32xf32>
    %c4_i32 = arith.constant 4 : i32
    %c8_i32_39 = arith.constant 8 : i32
    %110 = arith.muli %c4_i32, %c8_i32_39 : i32
    %111 = tpu.assume_multiple %110, 8 : i32
    %112 = arith.index_cast %111 : i32 to index
    %c0_40 = arith.constant 0 : index
    %113 = vector.load %arg9[%112, %c0_40] : memref<64x128xf32, #tpu.memory_space<vmem>>, vector<8x128xf32>
    %cst_41 = arith.constant dense<0.000000e+00> : vector<8x128xf32>
    %114 = tpu.matmul %109, %11, %cst_41 {dimension_numbers = #tpu.dot_dimension_numbers<[1], [0], [0], [1], [0, 0, 1, 1], [], []>} : vector<8x32xf32>, vector<32x128xf32>, vector<8x128xf32> -> vector<8x128xf32>
    %115 = arith.addf %113, %114 : vector<8x128xf32>
    %116 = arith.negf %115 : vector<8x128xf32>
    %117 = math.exp %116 : vector<8x128xf32>
    %cst_42 = arith.constant 1.000000e+00 : f32
    %118 = vector.broadcast %cst_42 : f32 to vector<8x128xf32>
    %119 = arith.addf %118, %117 : vector<8x128xf32>
    %120 = arith.divf %118, %119 : vector<8x128xf32>
    %121 = vector.extract_strided_slice %120 {offsets = [0, 0], sizes = [8, 32], strides = [1, 1]} : vector<8x128xf32> to vector<8x32xf32>
    %122 = vector.extract_strided_slice %120 {offsets = [0, 32], sizes = [8, 32], strides = [1, 1]} : vector<8x128xf32> to vector<8x32xf32>
    %123 = vector.extract_strided_slice %120 {offsets = [0, 64], sizes = [8, 32], strides = [1, 1]} : vector<8x128xf32> to vector<8x32xf32>
    %cst_43 = arith.constant 2.000000e+00 : f32
    %124 = vector.broadcast %cst_43 : f32 to vector<8x32xf32>
    %125 = arith.mulf %124, %123 : vector<8x32xf32>
    %cst_44 = arith.constant 1.000000e+00 : f32
    %126 = vector.broadcast %cst_44 : f32 to vector<8x32xf32>
    %127 = arith.subf %125, %126 : vector<8x32xf32>
    %128 = vector.extract_strided_slice %120 {offsets = [0, 96], sizes = [8, 32], strides = [1, 1]} : vector<8x128xf32> to vector<8x32xf32>
    %129 = arith.mulf %122, %107 : vector<8x32xf32>
    %130 = arith.mulf %121, %127 : vector<8x32xf32>
    %131 = arith.addf %129, %130 : vector<8x32xf32>
    %132 = math.tanh %131 : vector<8x32xf32>
    %133 = arith.mulf %128, %132 : vector<8x32xf32>
    %c5_i32 = arith.constant 5 : i32
    %c8_i32_45 = arith.constant 8 : i32
    %134 = arith.muli %c5_i32, %c8_i32_45 : i32
    %135 = tpu.assume_multiple %134, 8 : i32
    %136 = arith.index_cast %135 : i32 to index
    %c0_46 = arith.constant 0 : index
    %137 = vector.load %arg9[%136, %c0_46] : memref<64x128xf32, #tpu.memory_space<vmem>>, vector<8x128xf32>
    %cst_47 = arith.constant dense<0.000000e+00> : vector<8x128xf32>
    %138 = tpu.matmul %133, %11, %cst_47 {dimension_numbers = #tpu.dot_dimension_numbers<[1], [0], [0], [1], [0, 0, 1, 1], [], []>} : vector<8x32xf32>, vector<32x128xf32>, vector<8x128xf32> -> vector<8x128xf32>
    %139 = arith.addf %137, %138 : vector<8x128xf32>
    %140 = arith.negf %139 : vector<8x128xf32>
    %141 = math.exp %140 : vector<8x128xf32>
    %cst_48 = arith.constant 1.000000e+00 : f32
    %142 = vector.broadcast %cst_48 : f32 to vector<8x128xf32>
    %143 = arith.addf %142, %141 : vector<8x128xf32>
    %144 = arith.divf %142, %143 : vector<8x128xf32>
    %145 = vector.extract_strided_slice %144 {offsets = [0, 0], sizes = [8, 32], strides = [1, 1]} : vector<8x128xf32> to vector<8x32xf32>
    %146 = vector.extract_strided_slice %144 {offsets = [0, 32], sizes = [8, 32], strides = [1, 1]} : vector<8x128xf32> to vector<8x32xf32>
    %147 = vector.extract_strided_slice %144 {offsets = [0, 64], sizes = [8, 32], strides = [1, 1]} : vector<8x128xf32> to vector<8x32xf32>
    %cst_49 = arith.constant 2.000000e+00 : f32
    %148 = vector.broadcast %cst_49 : f32 to vector<8x32xf32>
    %149 = arith.mulf %148, %147 : vector<8x32xf32>
    %cst_50 = arith.constant 1.000000e+00 : f32
    %150 = vector.broadcast %cst_50 : f32 to vector<8x32xf32>
    %151 = arith.subf %149, %150 : vector<8x32xf32>
    %152 = vector.extract_strided_slice %144 {offsets = [0, 96], sizes = [8, 32], strides = [1, 1]} : vector<8x128xf32> to vector<8x32xf32>
    %153 = arith.mulf %146, %131 : vector<8x32xf32>
    %154 = arith.mulf %145, %151 : vector<8x32xf32>
    %155 = arith.addf %153, %154 : vector<8x32xf32>
    %156 = math.tanh %155 : vector<8x32xf32>
    %157 = arith.mulf %152, %156 : vector<8x32xf32>
    %c6_i32 = arith.constant 6 : i32
    %c8_i32_51 = arith.constant 8 : i32
    %158 = arith.muli %c6_i32, %c8_i32_51 : i32
    %159 = tpu.assume_multiple %158, 8 : i32
    %160 = arith.index_cast %159 : i32 to index
    %c0_52 = arith.constant 0 : index
    %161 = vector.load %arg9[%160, %c0_52] : memref<64x128xf32, #tpu.memory_space<vmem>>, vector<8x128xf32>
    %cst_53 = arith.constant dense<0.000000e+00> : vector<8x128xf32>
    %162 = tpu.matmul %157, %11, %cst_53 {dimension_numbers = #tpu.dot_dimension_numbers<[1], [0], [0], [1], [0, 0, 1, 1], [], []>} : vector<8x32xf32>, vector<32x128xf32>, vector<8x128xf32> -> vector<8x128xf32>
    %163 = arith.addf %161, %162 : vector<8x128xf32>
    %164 = arith.negf %163 : vector<8x128xf32>
    %165 = math.exp %164 : vector<8x128xf32>
    %cst_54 = arith.constant 1.000000e+00 : f32
    %166 = vector.broadcast %cst_54 : f32 to vector<8x128xf32>
    %167 = arith.addf %166, %165 : vector<8x128xf32>
    %168 = arith.divf %166, %167 : vector<8x128xf32>
    %169 = vector.extract_strided_slice %168 {offsets = [0, 0], sizes = [8, 32], strides = [1, 1]} : vector<8x128xf32> to vector<8x32xf32>
    %170 = vector.extract_strided_slice %168 {offsets = [0, 32], sizes = [8, 32], strides = [1, 1]} : vector<8x128xf32> to vector<8x32xf32>
    %171 = vector.extract_strided_slice %168 {offsets = [0, 64], sizes = [8, 32], strides = [1, 1]} : vector<8x128xf32> to vector<8x32xf32>
    %cst_55 = arith.constant 2.000000e+00 : f32
    %172 = vector.broadcast %cst_55 : f32 to vector<8x32xf32>
    %173 = arith.mulf %172, %171 : vector<8x32xf32>
    %cst_56 = arith.constant 1.000000e+00 : f32
    %174 = vector.broadcast %cst_56 : f32 to vector<8x32xf32>
    %175 = arith.subf %173, %174 : vector<8x32xf32>
    %176 = vector.extract_strided_slice %168 {offsets = [0, 96], sizes = [8, 32], strides = [1, 1]} : vector<8x128xf32> to vector<8x32xf32>
    %177 = arith.mulf %170, %155 : vector<8x32xf32>
    %178 = arith.mulf %169, %175 : vector<8x32xf32>
    %179 = arith.addf %177, %178 : vector<8x32xf32>
    %180 = math.tanh %179 : vector<8x32xf32>
    %181 = arith.mulf %176, %180 : vector<8x32xf32>
    %c7_i32 = arith.constant 7 : i32
    %c8_i32_57 = arith.constant 8 : i32
    %182 = arith.muli %c7_i32, %c8_i32_57 : i32
    %183 = tpu.assume_multiple %182, 8 : i32
    %184 = arith.index_cast %183 : i32 to index
    %c0_58 = arith.constant 0 : index
    %185 = vector.load %arg9[%184, %c0_58] : memref<64x128xf32, #tpu.memory_space<vmem>>, vector<8x128xf32>
    %cst_59 = arith.constant dense<0.000000e+00> : vector<8x128xf32>
    %186 = tpu.matmul %181, %11, %cst_59 {dimension_numbers = #tpu.dot_dimension_numbers<[1], [0], [0], [1], [0, 0, 1, 1], [], []>} : vector<8x32xf32>, vector<32x128xf32>, vector<8x128xf32> -> vector<8x128xf32>
    %187 = arith.addf %185, %186 : vector<8x128xf32>
    %188 = arith.negf %187 : vector<8x128xf32>
    %189 = math.exp %188 : vector<8x128xf32>
    %cst_60 = arith.constant 1.000000e+00 : f32
    %190 = vector.broadcast %cst_60 : f32 to vector<8x128xf32>
    %191 = arith.addf %190, %189 : vector<8x128xf32>
    %192 = arith.divf %190, %191 : vector<8x128xf32>
    %193 = vector.extract_strided_slice %192 {offsets = [0, 0], sizes = [8, 32], strides = [1, 1]} : vector<8x128xf32> to vector<8x32xf32>
    %194 = vector.extract_strided_slice %192 {offsets = [0, 32], sizes = [8, 32], strides = [1, 1]} : vector<8x128xf32> to vector<8x32xf32>
    %195 = vector.extract_strided_slice %192 {offsets = [0, 64], sizes = [8, 32], strides = [1, 1]} : vector<8x128xf32> to vector<8x32xf32>
    %cst_61 = arith.constant 2.000000e+00 : f32
    %196 = vector.broadcast %cst_61 : f32 to vector<8x32xf32>
    %197 = arith.mulf %196, %195 : vector<8x32xf32>
    %cst_62 = arith.constant 1.000000e+00 : f32
    %198 = vector.broadcast %cst_62 : f32 to vector<8x32xf32>
    %199 = arith.subf %197, %198 : vector<8x32xf32>
    %200 = vector.extract_strided_slice %192 {offsets = [0, 96], sizes = [8, 32], strides = [1, 1]} : vector<8x128xf32> to vector<8x32xf32>
    %201 = arith.mulf %194, %179 : vector<8x32xf32>
    %202 = arith.mulf %193, %199 : vector<8x32xf32>
    %203 = arith.addf %201, %202 : vector<8x32xf32>
    %204 = math.tanh %203 : vector<8x32xf32>
    %205 = arith.mulf %200, %204 : vector<8x32xf32>
    %c8_i32_63 = arith.constant 8 : i32
    %c0_64 = arith.constant 0 : index
    %c0_65 = arith.constant 0 : index
    %206 = vector.load %arg10[%c0_64, %c0_65] : memref<8x32xf32, #tpu.memory_space<vmem>>, vector<8x32xf32>
    tpu.vector_store %arg10[%c0_64, %c0_65], %205 {strides = array<i32>} : memref<8x32xf32, #tpu.memory_space<vmem>>, vector<8x32xf32>,
    %c0_66 = arith.constant 0 : index
    %c0_67 = arith.constant 0 : index
    %207 = vector.load %arg11[%c0_66, %c0_67] : memref<8x32xf32, #tpu.memory_space<vmem>>, vector<8x32xf32>
    tpu.vector_store %arg11[%c0_66, %c0_67], %203 {strides = array<i32>} : memref<8x32xf32, #tpu.memory_space<vmem>>, vector<8x32xf32>,
    %c0_i32_68 = arith.constant 0 : i32
    %208 = arith.cmpi eq, %arg1, %c0_i32_68 : i32
    %209 = arith.extui %208 : i1 to i32
    %c0_i32_69 = arith.constant 0 : i32
    %210 = arith.cmpi ne, %209, %c0_i32_69 : i32
    scf.if %210 {
      %c0_70 = arith.constant 0 : index
      %c0_71 = arith.constant 0 : index
      %211 = vector.load %arg6[%c0_70, %c0_71] : memref<32x1xf32, #tpu.memory_space<vmem>>, vector<32x1xf32>
      %cst_72 = arith.constant dense<0.000000e+00> : vector<8x1xf32>
      %212 = tpu.matmul %205, %211, %cst_72 {dimension_numbers = #tpu.dot_dimension_numbers<[1], [0], [0], [1], [0, 0, 1, 1], [], []>} : vector<8x32xf32>, vector<32x1xf32>, vector<8x1xf32> -> vector<8x1xf32>
      %c0_73 = arith.constant 0 : index
      %c0_74 = arith.constant 0 : index
      %213 = vector.load %arg7[%c0_73, %c0_74] : memref<1x1xf32, #tpu.memory_space<vmem>>, vector<1x1xf32>
      %214 = vector.broadcast %213 : vector<1x1xf32> to vector<8x1xf32>
      %215 = arith.addf %212, %214 : vector<8x1xf32>
      %c0_75 = arith.constant 0 : index
      %c0_76 = arith.constant 0 : index
      %216 = vector.load %arg8[%c0_75, %c0_76] : memref<8x1xf32, #tpu.memory_space<vmem>>, vector<8x1xf32>
      tpu.vector_store %arg8[%c0_75, %c0_76], %215 {strides = array<i32>} : memref<8x1xf32, #tpu.memory_space<vmem>>, vector<8x1xf32>,
    } else {
    }
    return
  }
  func.func @transform_0(%arg0: i32, %arg1: i32) -> (i32, i32, i32) {
    %c0_i32 = arith.constant 0 : i32
    %c0_i32_0 = arith.constant 0 : i32
    return %arg1, %arg0, %c0_i32 : i32, i32, i32
  }
  func.func @transform_1(%arg0: i32, %arg1: i32) -> (i32, i32) {
    %c0_i32 = arith.constant 0 : i32
    %c0_i32_0 = arith.constant 0 : i32
    %c0_i32_1 = arith.constant 0 : i32
    return %c0_i32, %c0_i32_0 : i32, i32
  }
  func.func @transform_2(%arg0: i32, %arg1: i32) -> (i32, i32) {
    %c0_i32 = arith.constant 0 : i32
    %c0_i32_0 = arith.constant 0 : i32
    %c0_i32_1 = arith.constant 0 : i32
    return %c0_i32, %c0_i32_0 : i32, i32
  }
  func.func @transform_3(%arg0: i32, %arg1: i32) -> (i32, i32) {
    %c0_i32 = arith.constant 0 : i32
    %c0_i32_0 = arith.constant 0 : i32
    %c0_i32_1 = arith.constant 0 : i32
    return %c0_i32, %c0_i32_0 : i32, i32
  }
  func.func @transform_4(%arg0: i32, %arg1: i32) -> (i32, i32) {
    %c0_i32 = arith.constant 0 : i32
    %c0_i32_0 = arith.constant 0 : i32
    %c0_i32_1 = arith.constant 0 : i32
    return %c0_i32, %c0_i32_0 : i32, i32
  }
  func.func @transform_5(%arg0: i32, %arg1: i32) -> (i32, i32) {
    %c0_i32 = arith.constant 0 : i32
    %c0_i32_0 = arith.constant 0 : i32
    %c0_i32_1 = arith.constant 0 : i32
    return %c0_i32, %c0_i32_0 : i32, i32
  }
  func.func @transform_6(%arg0: i32, %arg1: i32) -> (i32, i32) {
    %c0_i32 = arith.constant 0 : i32
    %c0_i32_0 = arith.constant 0 : i32
    return %arg0, %c0_i32 : i32, i32
  }
}

</mosaic_0001>

<bundles_post_ra>
// kernel: tpu_custom_call.1
= control target key start
LH: loop header
LB: loop body
LE: loop exit
PB: predicated region body
PF: predicated region fallthrough
CT: control target
= control target key end

     0   :  { %s1756_s0 = inlined_call_operand.hbm [shape: f32[8,8,16], index: 0, kind: input, shape index: {}]   ;;  %s1757_s1 = inlined_call_operand.hbm [shape: f32[16,128], index: 1, kind: input, shape index: {}]   ;;  %s1758_s2 = inlined_call_operand.vmem [shape: f32[32,128], index: 2, kind: input, shape index: {}]   ;;  %s1759_s3 = inlined_call_operand.vmem [shape: f32[1,128], index: 3, kind: input, shape index: {}]   ;;  %s1760_s4 = inlined_call_operand.vmem [shape: f32[32,1], index: 4, kind: input, shape index: {}]   ;;  %s1761_s5 = inlined_call_operand.<no memory space> [shape: f32[1,1], index: 5, kind: input, shape index: {}]   ;;  %s1762_s6 = inlined_call_operand.vmem [shape: f32[8,1], index: 6, kind: output, shape index: {}]  }
   0x1   :  { %v11_v0 = vstv %s1761_s5 }
   0x2   :  { %12 = vst [vmem:[#allocation5] sm:$0x1] %v11_v0 }
   0x3   :  { %13 = vsyncpa [#allocation7], 0 }
   0x4   :  { %14 = vsyncpa [#allocation9], 0  ;;  %s1520_s23 = smov [#allocation6]   ;;  %s1472_s27 = scalar_lea.hbm %s1756_s0, 1024 }
   0x5   :  { %s20_s24 = sshll.u32 %s1520_s23, 4  ;;  %p1473_p0 = scmp.ne.s32.totalorder %s1756_s0, %s1472_s27  ;;  %s21_s24 = int_to_ptr.vmem [resolvable:$true] %s20_s24 }
   0x6   :  { %p1476_p1 = scmp.lt.u32.totalorder %s1472_s27, %s1756_s0 }
   0x8   :  { %p1478_p2 = pnand %p1476_p1, %p1473_p0 }
   0xa   :  { %1481 = shalt.err (!%p1478_p2)
}
   0xb   :  { %s1482_s5 = scalar_lea.vmem %s21_s24, 1024  ;;  %p1487_p4 = scmp.lt.s32.totalorder %s21_s24, %s21_s24 }
   0xc   :  { %p1483_p3 = scmp.ne.s32.totalorder %s21_s24, %s1482_s5  ;;  %p1488_p5 = scmp.lt.s32.totalorder %s1482_s5, %s1482_s5 }
   0xe   :  { %p1489_p6 = por %p1488_p5, %p1487_p4 }
  0x10   :  { %p1490_p7 = pnand %p1489_p6, %p1483_p3 }
  0x12   :  { %1493 = shalt.err (!%p1490_p7)
}
  0x13   :  { %s1521_s8 = smov 128   ;;  %s1522_s9 = smov 8  }
  0x14   :  { %26 = dma.hbm_to_vmem [thread:$0]  %s1756_s0, 1024, %s21_s24, [#allocation7], %s1521_s8, %s1521_s8, %s1522_s9  }
  0x15   :  { %s1523_s12 = smov [#allocation8]   ;;  %s1494_s16 = scalar_lea.hbm %s1757_s1, 256 }
  0x16   :  { %s32_s13 = sshll.u32 %s1523_s12, 4  ;;  %p1495_p8 = scmp.ne.s32.totalorder %s1757_s1, %s1494_s16  ;;  %s33_s13 = int_to_ptr.vmem [resolvable:$true] %s32_s13 }
  0x17   :  { %p1498_p9 = scmp.lt.u32.totalorder %s1494_s16, %s1757_s1 }
  0x19   :  { %p1500_p10 = pnand %p1498_p9, %p1495_p8 }
  0x1b   :  { %1503 = shalt.err (!%p1500_p10)
}
  0x1c   :  { %s1504_s21 = scalar_lea.vmem %s33_s13, 256  ;;  %p1509_p12 = scmp.lt.s32.totalorder %s33_s13, %s33_s13 }
  0x1d   :  { %p1505_p11 = scmp.ne.s32.totalorder %s33_s13, %s1504_s21  ;;  %p1510_p13 = scmp.lt.s32.totalorder %s1504_s21, %s1504_s21 }
  0x1f   :  { %p1511_p0 = por %p1510_p13, %p1509_p12 }
  0x21   :  { %p1512_p1 = pnand %p1511_p0, %p1505_p11 }
  0x23   :  { %1515 = shalt.err (!%p1512_p1)
}
  0x24   :  { %38 = dma.hbm_to_vmem [thread:$0]  %s1757_s1, 256, %s33_s13, [#allocation9], %s1521_s8, %s1521_s8, %s1522_s9  }
  0x25   :  { %1516 = dma.done.wait [#allocation7], 1024  }
  0x26   :  { %1517 = vsyncadd [#allocation7], 4294966272 }
  0x27   :  { %1518 = dma.done.wait [#allocation9], 256  }
  0x28   :  { %1519 = vsyncadd [#allocation9], 4294967040  ;;  %v1524_v1 = vmov 0.0|0.0   ;;  %vm1525_vm0 = vmmov 0   ;;  %v1526_v2 = vmov 0.0   ;;  %vm57_vm1 = vcmask 261120  }
  0x29   :  { %1360 = vmatprep.subr.bf16.mxu1 %v1524_v1  ;;  %1265 = vmatprep.mubr.msk.f32.mxu1 %vm1525_vm0, %v1526_v2  ;;  %58 = vst.msk [vmem:[#allocation3] sm:$0xff] %vm57_vm1, %v1526_v2  ;;  %59 = vst.msk [vmem:[#allocation4] sm:$0xff] %vm57_vm1, %v1526_v2  ;;  %vm77_vm2 = vcmask 130048   ;;  %v68_v3 = vld [vmem:[#allocation8] sm:$0xff]  ;;  %v69_v4 = vld [vmem:[#allocation8 + $0x8] sm:$0xff]  ;;  %s1527_s7 = smov 64  }
  0x2a   :  { %v215_v5 = vld [vmem:[%s1758_s2] sm:$0xff]  ;;  %v1356_v6 = vpack.c.bf16 %v69_v4, %v68_v3  ;;  %v216_v7 = vld [vmem:[%s1758_s2 + $0x8] sm:$0xff]  ;;  %v60_v8 = vld [vmem:[#allocation6] sm:$0xff]  ;;  %s1529_s15 = smov 96   ;;  %vm1143_vm3 = vcmask 7168  }
  0x2b   :  { %v1605_v9 = vpack.c.bf16 %v216_v7, %v215_v5  ;;  %1245 = vmatprep.mubr.msk.f32.mxu0 %vm77_vm2, %v60_v8  ;;  %v217_v10 = vld [vmem:[%s1758_s2 + $0x10] sm:$0xff]  ;;  %v218_v11 = vld [vmem:[%s1758_s2 + $0x18] sm:$0xff]  ;;  %v1636_v15 = vld [vmem:[%s1759_s3] ss:$0 sm:$0xff]  ;;  %s1528_s3 = smov 32  }
  0x2c   :  { %1357 = vmatprep.subr.bf16.mxu0 %v1356_v6  ;;  %v61_v12 = vld [vmem:[#allocation6 + $0x8] sm:$0xff]  ;;  %v1615_v13 = vpack.c.bf16 %v218_v11, %v217_v10  ;;  %v62_v54 = vld [vmem:[#allocation6 + $0x10] sm:$0xff]  ;;  %v63_v55 = vld [vmem:[#allocation6 + $0x18] sm:$0xff] }
  0x2d   :  { %1362 = vmatpush3.bf16.msra.mxu1 %v1605_v9  ;;  %1359 = vmatpush3.bf16.msra.mxu0 %v1356_v6  ;;  %v64_v56 = vld [vmem:[#allocation6 + $0x20] sm:$0xff]  ;;  %v65_v57 = vld [vmem:[#allocation6 + $0x28] sm:$0xff]  ;;  %v66_v58 = vld [vmem:[#allocation6 + $0x30] sm:$0xff] }
  0x2e   :  { %1363 = vmatprep.subr.bf16.mxu1 %v1524_v1  ;;  %1372 = vmatprep.subr.bf16.mxu0 %v1524_v1  ;;  %v67_v59 = vld [vmem:[#allocation6 + $0x38] sm:$0xff] }
  0x30   :  { %1246 = vmatmul.mubr.msk.f32.vlgmr.msra.gmra.mrb[0].mxu0 %vm77_vm2, %v61_v12  ;;  %v219_v14 = vld [vmem:[#allocation3] sm:$0xff]  ;;  %v220_v28 = vld [vmem:[#allocation4] sm:$0xff] }
  0x31   :  { %1365 = vmatpush3.bf16.msra.mxu1 %v1615_v13  ;;  %1374 = vmatpush3.bf16.msra.mxu0 %v1605_v9 }
  0x32   :  { %1366 = vmatprep.subr.bf16.mxu1 %v1524_v1  ;;  %1375 = vmatprep.subr.bf16.mxu0 %v1524_v1 }
  0x33   :  { %1248 = vmatprep.mubr.msk.f32.mxu0 %vm77_vm2, %v62_v54 }
  0x34   :  { %1266 = vmatmul.mubr.msk.f32.vlgmr.msra.gmra.mrb[0].mxu1 %vm57_vm1, %v219_v14  ;;  %1249 = vmatmul.mubr.msk.f32.gmra.mrb[2].mxu0 %vm77_vm2, %v63_v55 }
  0x35   :  { %1368 = vmatpush3.bf16.msra.mxu1 %v1605_v9  ;;  %1276 = vmatprep.mubr.msk.f32.mxu1 %vm1525_vm0, %v1526_v2 }
  0x36   :  { %1369 = vmatprep.subr.bf16.mxu1 %v1524_v1  ;;  %1377 = vmatpush3.bf16.msra.mxu0 %v1615_v13 }
  0x37   :  { %1384 = vmatprep.subr.bf16.mxu0 %v1524_v1  ;;  %1251 = vmatprep.mubr.msk.f32.mxu0 %vm77_vm2, %v64_v56 }
  0x38   :  { %1252 = vmatmul.mubr.msk.f32.gmra.mrb[4].mxu0 %vm77_vm2, %v65_v57 }
  0x39   :  { %1371 = vmatpush3.bf16.msra.mxu1 %v1615_v13  ;;  %1254 = vmatprep.mubr.msk.f32.mxu0 %vm77_vm2, %v66_v58 }
  0x3a   :  { %1378 = vmatprep.subr.bf16.mxu1 %v1524_v1 }
  0x3c   :  { %1255 = vmatmul.mubr.msk.f32.gmra.mrb[6].mxu0 %vm77_vm2, %v67_v59 }
  0x3d   :  { %1287 = vmatprep.mubr.msk.f32.mxu0 %vm1525_vm0, %v1526_v2 }
 0x103   :  { %v1247_v16 = vpop.f32.mrb[0].mxu0 }
 0x104   :  { %v168_v17 = vpop.f32.mrb[1].mxu0  ;;  %v174_v39 = vadd.f32 %v1247_v16, %v1636_v15 }
 0x105   :  { %v169_v18 = vadd.f32 %v1636_v15, %v168_v17 }
 0x107   :  { %v292_v19 = vpop.f32.mrb[0].mxu1  ;;  %v1250_v63 = vpop.f32.mrb[2].mxu0 }
 0x108   :  { %v296_v20 = vadd.f32 %v292_v19, %v169_v18  ;;  %v1267_v21 = vpop.f32.mrb[1].mxu1  ;;  %v178_v0 = vpop.f32.mrb[3].mxu0 }
 0x109   :  { %v179_v8 = vadd.f32 %v1636_v15, %v178_v0 }
 0x10a   :  { %v1161_v22 = vmul.f32 -1.442695, %v296_v20 }
 0x10b   :  { %v1664_v3 = vpop.f32.mrb[4].mxu0 }
 0x10c   :  { %1424 = vpow2.f32 %v1161_v22  ;;  %v1666_v4 = vpop.f32.mrb[5].mxu0 }
 0x10f   :  { %v1668_v5 = vpop.f32.mrb[6].mxu0 }
 0x110   :  { %v1670_v6 = vpop.f32.mrb[7].mxu0 }
 0x116   :  { %v1425_v23 = vpop.eup %1424 }
 0x117   :  { %v300_v24 = vadd.f32 1.0, %v1425_v23 }
 0x119   :  { %1426 = vrcp.f32 %v300_v24 }
 0x123   :  { %v1427_v25 = vpop.eup %1426 }
 0x124   :  { %v303_v26 = vmul.f32 2.0, %v1427_v25 }
 0x126   :  { %v1162_v27 = vadd.f32 -1.0, %v303_v26 }
 0x128   :  { %311 = vrot.lane.b32.xlu0 %v1162_v27, %s1527_s7 }
 0x12c   :  { %306 = vrot.lane.b32.xlu0 %v220_v28, %s1528_s3 }
 0x19a   :  { %v312_v29 = vpop.permute.xlu0 %311 }
 0x19b   :  { %v314_v30 = vmul.f32 %v1427_v25, %v312_v29 }
 0x19d   :  { %316 = vrot.lane.b32.xlu1 %v314_v30, %s1528_s3  ;;  %v184_v30 = vadd.f32 %v1250_v63, %v1636_v15 }
 0x19e   :  { %v307_v31 = vpop.permute.xlu0 %306 }
 0x19f   :  { %v309_v32 = vmul.f32 %v1427_v25, %v307_v31 }
 0x20f   :  { %v317_v33 = vpop.permute.xlu1 %316 }
 0x210   :  { %v319_v34 = vadd.f32 %v317_v33, %v309_v32 }
 0x212   :  { %1428 = vtanh.f32 %v319_v34 }
 0x21c   :  { %v1429_v35 = vpop.eup %1428 }
 0x21d   :  { %322 = vrot.lane.b32.xlu1 %v1429_v35, %s1527_s7 }
 0x28f   :  { %v323_v36 = vpop.permute.xlu1 %322 }
 0x290   :  { %v325_v37 = vmul.f32 %v1427_v25, %v323_v36 }
 0x292   :  { %329 = vrot.lane.b32.xlu0 %v325_v37, %s1528_s3 }
 0x304   :  { %v330_v38 = vpop.permute.xlu0 %329 }
 0x305   :  { %1277 = vmatmul.mubr.msk.f32.vlgmr.msra.gmra.mrb[2].mxu1 %vm57_vm1, %v330_v38 }
 0x306   :  { %1380 = vmatpush3.bf16.msra.mxu1 %v1605_v9  ;;  %1298 = vmatprep.mubr.msk.f32.mxu1 %vm1525_vm0, %v1526_v2 }
 0x307   :  { %1381 = vmatprep.subr.bf16.mxu1 %v1524_v1 }
 0x30a   :  { %1383 = vmatpush3.bf16.msra.mxu1 %v1615_v13 }
 0x30b   :  { %1390 = vmatprep.subr.bf16.mxu1 %v1524_v1 }
 0x3d8   :  { %v399_v40 = vpop.f32.mrb[2].mxu1 }
 0x3d9   :  { %v403_v41 = vadd.f32 %v399_v40, %v174_v39  ;;  %v1278_v42 = vpop.f32.mrb[3].mxu1 }
 0x3db   :  { %v1164_v43 = vmul.f32 -1.442695, %v403_v41 }
 0x3dd   :  { %1430 = vpow2.f32 %v1164_v43 }
 0x3e7   :  { %v1431_v44 = vpop.eup %1430 }
 0x3e8   :  { %v407_v45 = vadd.f32 1.0, %v1431_v44 }
 0x3ea   :  { %1432 = vrcp.f32 %v407_v45 }
 0x3f4   :  { %v1433_v46 = vpop.eup %1432 }
 0x3f5   :  { %v410_v47 = vmul.f32 2.0, %v1433_v46  ;;  %v412_v51 = vmul.f32 %v1433_v46, %v319_v34 }
 0x3f7   :  { %v1165_v48 = vadd.f32 -1.0, %v410_v47 }
 0x3f9   :  { %414 = vrot.lane.b32.xlu1 %v1165_v48, %s1527_s7 }
 0x46b   :  { %v415_v49 = vpop.permute.xlu1 %414 }
 0x46c   :  { %v417_v50 = vmul.f32 %v1433_v46, %v415_v49  ;;  %v189_v49 = vadd.f32 %v1636_v15, %v1666_v4 }
 0x46e   :  { %419 = vrot.lane.b32.xlu0 %v417_v50, %s1528_s3 }
 0x4e0   :  { %v420_v52 = vpop.permute.xlu0 %419 }
 0x4e1   :  { %v422_v53 = vadd.f32 %v420_v52, %v412_v51 }
 0x4e3   :  { %1434 = vtanh.f32 %v422_v53 }
 0x4ed   :  { %v1435_v60 = vpop.eup %1434 }
 0x4ee   :  { %425 = vrot.lane.b32.xlu1 %v1435_v60, %s1527_s7 }
 0x560   :  { %v426_v61 = vpop.permute.xlu1 %425 }
 0x561   :  { %v428_v62 = vmul.f32 %v1433_v46, %v426_v61 }
 0x563   :  { %432 = vrot.lane.b32.xlu0 %v428_v62, %s1528_s3 }
 0x5d5   :  { %v433_v7 = vpop.permute.xlu0 %432 }
 0x5d6   :  { %1288 = vmatmul.mubr.msk.f32.vlgmr.msra.gmra.mrb[8].mxu0 %vm57_vm1, %v433_v7 }
 0x5d7   :  { %1386 = vmatpush3.bf16.msra.mxu0 %v1605_v9  ;;  %1309 = vmatprep.mubr.msk.f32.mxu0 %vm1525_vm0, %v1526_v2 }
 0x5d8   :  { %1387 = vmatprep.subr.bf16.mxu0 %v1524_v1 }
 0x5db   :  { %1389 = vmatpush3.bf16.msra.mxu0 %v1615_v13 }
 0x5dc   :  { %1396 = vmatprep.subr.bf16.mxu0 %v1524_v1 }
 0x6a9   :  { %v502_v10 = vpop.f32.mrb[8].mxu0 }
 0x6aa   :  { %v506_v11 = vadd.f32 %v502_v10, %v179_v8  ;;  %v1289_v12 = vpop.f32.mrb[9].mxu0  ;;  %v194_v10 = vadd.f32 %v1664_v3, %v1636_v15 }
 0x6ac   :  { %v1167_v14 = vmul.f32 -1.442695, %v506_v11 }
 0x6ae   :  { %1436 = vpow2.f32 %v1167_v14 }
 0x6b8   :  { %v1437_v16 = vpop.eup %1436 }
 0x6b9   :  { %v510_v17 = vadd.f32 1.0, %v1437_v16 }
 0x6bb   :  { %1438 = vrcp.f32 %v510_v17 }
 0x6c5   :  { %v1439_v18 = vpop.eup %1438 }
 0x6c6   :  { %v513_v19 = vmul.f32 2.0, %v1439_v18  ;;  %v515_v23 = vmul.f32 %v1439_v18, %v422_v53 }
 0x6c8   :  { %v1168_v20 = vadd.f32 -1.0, %v513_v19 }
 0x6ca   :  { %517 = vrot.lane.b32.xlu1 %v1168_v20, %s1527_s7 }
 0x73c   :  { %v518_v21 = vpop.permute.xlu1 %517 }
 0x73d   :  { %v520_v22 = vmul.f32 %v1439_v18, %v518_v21 }
 0x73f   :  { %522 = vrot.lane.b32.xlu0 %v520_v22, %s1528_s3 }
 0x7b1   :  { %v523_v24 = vpop.permute.xlu0 %522 }
 0x7b2   :  { %v525_v25 = vadd.f32 %v523_v24, %v515_v23 }
 0x7b4   :  { %1440 = vtanh.f32 %v525_v25 }
 0x7be   :  { %v1441_v26 = vpop.eup %1440 }
 0x7bf   :  { %528 = vrot.lane.b32.xlu1 %v1441_v26, %s1527_s7 }
 0x831   :  { %v529_v27 = vpop.permute.xlu1 %528 }
 0x832   :  { %v531_v28 = vmul.f32 %v1439_v18, %v529_v27 }
 0x834   :  { %535 = vrot.lane.b32.xlu0 %v531_v28, %s1528_s3  ;;  %v199_v28 = vadd.f32 %v1636_v15, %v1670_v6 }
 0x8a6   :  { %v536_v29 = vpop.permute.xlu0 %535 }
 0x8a7   :  { %1299 = vmatmul.mubr.msk.f32.vlgmr.msra.gmra.mrb[4].mxu1 %vm57_vm1, %v536_v29 }
 0x8a8   :  { %1392 = vmatpush3.bf16.msra.mxu1 %v1605_v9  ;;  %1320 = vmatprep.mubr.msk.f32.mxu1 %vm1525_vm0, %v1526_v2 }
 0x8a9   :  { %1393 = vmatprep.subr.bf16.mxu1 %v1524_v1 }
 0x8ac   :  { %1395 = vmatpush3.bf16.msra.mxu1 %v1615_v13 }
 0x8ad   :  { %1402 = vmatprep.subr.bf16.mxu1 %v1524_v1 }
 0x97a   :  { %v605_v31 = vpop.f32.mrb[4].mxu1 }
 0x97b   :  { %v609_v32 = vadd.f32 %v605_v31, %v184_v30  ;;  %v1300_v33 = vpop.f32.mrb[5].mxu1 }
 0x97d   :  { %v1170_v34 = vmul.f32 -1.442695, %v609_v32 }
 0x97f   :  { %1442 = vpow2.f32 %v1170_v34 }
 0x989   :  { %v1443_v35 = vpop.eup %1442 }
 0x98a   :  { %v613_v36 = vadd.f32 1.0, %v1443_v35 }
 0x98c   :  { %1444 = vrcp.f32 %v613_v36 }
 0x996   :  { %v1445_v37 = vpop.eup %1444 }
 0x997   :  { %v616_v38 = vmul.f32 2.0, %v1445_v37  ;;  %v618_v42 = vmul.f32 %v1445_v37, %v525_v25 }
 0x999   :  { %v1171_v39 = vadd.f32 -1.0, %v616_v38 }
 0x99b   :  { %620 = vrot.lane.b32.xlu1 %v1171_v39, %s1527_s7 }
 0xa0d   :  { %v621_v40 = vpop.permute.xlu1 %620 }
 0xa0e   :  { %v623_v41 = vmul.f32 %v1445_v37, %v621_v40 }
 0xa10   :  { %625 = vrot.lane.b32.xlu0 %v623_v41, %s1528_s3 }
 0xa82   :  { %v626_v43 = vpop.permute.xlu0 %625 }
 0xa83   :  { %v628_v44 = vadd.f32 %v626_v43, %v618_v42 }
 0xa85   :  { %1446 = vtanh.f32 %v628_v44 }
 0xa8f   :  { %v1447_v45 = vpop.eup %1446 }
 0xa90   :  { %631 = vrot.lane.b32.xlu1 %v1447_v45, %s1527_s7  ;;  %v204_v45 = vadd.f32 %v1668_v5, %v1636_v15  ;;  %v1060_v5 = vld [vmem:[%s1760_s4] sm:$0xff] }
 0xb02   :  { %v632_v46 = vpop.permute.xlu1 %631 }
 0xb03   :  { %v634_v47 = vmul.f32 %v1445_v37, %v632_v46 }
 0xb05   :  { %638 = vrot.lane.b32.xlu0 %v634_v47, %s1528_s3 }
 0xb77   :  { %v639_v48 = vpop.permute.xlu0 %638 }
 0xb78   :  { %1310 = vmatmul.mubr.msk.f32.vlgmr.msra.gmra.mrb[10].mxu0 %vm57_vm1, %v639_v48 }
 0xb79   :  { %1398 = vmatpush3.bf16.msra.mxu0 %v1605_v9  ;;  %1331 = vmatprep.mubr.msk.f32.mxu0 %vm1525_vm0, %v1526_v2 }
 0xb7a   :  { %1399 = vmatprep.subr.bf16.mxu0 %v1524_v1 }
 0xb7d   :  { %1401 = vmatpush3.bf16.msra.mxu0 %v1615_v13 }
 0xb7e   :  { %1408 = vmatprep.subr.bf16.mxu0 %v1524_v1 }
 0xc4b   :  { %v708_v50 = vpop.f32.mrb[10].mxu0 }
 0xc4c   :  { %v712_v51 = vadd.f32 %v708_v50, %v189_v49  ;;  %v1311_v52 = vpop.f32.mrb[11].mxu0 }
 0xc4e   :  { %v1173_v53 = vmul.f32 -1.442695, %v712_v51 }
 0xc50   :  { %1448 = vpow2.f32 %v1173_v53 }
 0xc5a   :  { %v1449_v54 = vpop.eup %1448 }
 0xc5b   :  { %v716_v55 = vadd.f32 1.0, %v1449_v54 }
 0xc5d   :  { %1450 = vrcp.f32 %v716_v55 }
 0xc67   :  { %v1451_v56 = vpop.eup %1450 }
 0xc68   :  { %v719_v57 = vmul.f32 2.0, %v1451_v56  ;;  %v721_v61 = vmul.f32 %v1451_v56, %v628_v44 }
 0xc6a   :  { %v1174_v58 = vadd.f32 -1.0, %v719_v57 }
 0xc6c   :  { %723 = vrot.lane.b32.xlu1 %v1174_v58, %s1527_s7 }
 0xcde   :  { %v724_v59 = vpop.permute.xlu1 %723 }
 0xcdf   :  { %v726_v60 = vmul.f32 %v1451_v56, %v724_v59  ;;  %v1061_v59 = vld [vmem:[%s1760_s4 + $0x8] sm:$0xff] }
 0xce1   :  { %728 = vrot.lane.b32.xlu0 %v726_v60, %s1528_s3  ;;  %v1062_v60 = vld [vmem:[%s1760_s4 + $0x10] sm:$0xff] }
 0xd53   :  { %v729_v62 = vpop.permute.xlu0 %728 }
 0xd54   :  { %v731_v63 = vadd.f32 %v729_v62, %v721_v61  ;;  %v1409_v61 = vpack.c.bf16 %v1061_v59, %v1060_v5  ;;  %v1063_v62 = vld [vmem:[%s1760_s4 + $0x18] sm:$0xff] }
 0xd56   :  { %1452 = vtanh.f32 %v731_v63 }
 0xd60   :  { %v1453_v0 = vpop.eup %1452 }
 0xd61   :  { %734 = vrot.lane.b32.xlu1 %v1453_v0, %s1527_s7 }
 0xdd3   :  { %v735_v4 = vpop.permute.xlu1 %734 }
 0xdd4   :  { %v737_v7 = vmul.f32 %v1451_v56, %v735_v4 }
 0xdd6   :  { %741 = vrot.lane.b32.xlu0 %v737_v7, %s1528_s3 }
 0xe48   :  { %v742_v8 = vpop.permute.xlu0 %741 }
 0xe49   :  { %1321 = vmatmul.mubr.msk.f32.vlgmr.msra.gmra.mrb[6].mxu1 %vm57_vm1, %v742_v8 }
 0xe4a   :  { %1404 = vmatpush3.bf16.msra.mxu1 %v1605_v9  ;;  %1342 = vmatprep.mubr.msk.f32.mxu1 %vm1525_vm0, %v1526_v2 }
 0xe4b   :  { %1405 = vmatprep.subr.bf16.mxu1 %v1524_v1 }
 0xe4e   :  { %1407 = vmatpush3.bf16.msra.mxu1 %v1615_v13 }
 0xf1c   :  { %v811_v11 = vpop.f32.mrb[6].mxu1 }
 0xf1d   :  { %v815_v12 = vadd.f32 %v811_v11, %v194_v10  ;;  %v1322_v14 = vpop.f32.mrb[7].mxu1  ;;  %v1184_v11 = vld [vmem:[#allocation5] ss:$0 sm:$0xff] }
 0xf1f   :  { %v1176_v16 = vmul.f32 -1.442695, %v815_v12 }
 0xf21   :  { %1454 = vpow2.f32 %v1176_v16 }
 0xf2b   :  { %v1455_v17 = vpop.eup %1454 }
 0xf2c   :  { %v819_v18 = vadd.f32 1.0, %v1455_v17 }
 0xf2e   :  { %1456 = vrcp.f32 %v819_v18 }
 0xf38   :  { %v1457_v19 = vpop.eup %1456 }
 0xf39   :  { %v822_v9 = vmul.f32 2.0, %v1457_v19  ;;  %v824_v13 = vmul.f32 %v1457_v19, %v731_v63  ;;  %v1412_v63 = vpack.c.bf16 %v1063_v62, %v1062_v60 }
 0xf3b   :  { %v1177_v20 = vadd.f32 -1.0, %v822_v9 }
 0xf3d   :  { %826 = vrot.lane.b32.xlu1 %v1177_v20, %s1527_s7 }
 0xfaf   :  { %v827_v21 = vpop.permute.xlu1 %826 }
 0xfb0   :  { %v829_v22 = vmul.f32 %v1457_v19, %v827_v21 }
 0xfb2   :  { %831 = vrot.lane.b32.xlu0 %v829_v22, %s1528_s3 }
0x1024   :  { %v832_v23 = vpop.permute.xlu0 %831 }
0x1025   :  { %v834_v3 = vadd.f32 %v832_v23, %v824_v13 }
0x1027   :  { %1458 = vtanh.f32 %v834_v3 }
0x1031   :  { %v1459_v24 = vpop.eup %1458 }
0x1032   :  { %837 = vrot.lane.b32.xlu1 %v1459_v24, %s1527_s7 }
0x10a4   :  { %v838_v25 = vpop.permute.xlu1 %837 }
0x10a5   :  { %v840_v26 = vmul.f32 %v1457_v19, %v838_v25 }
0x10a7   :  { %844 = vrot.lane.b32.xlu0 %v840_v26, %s1528_s3 }
0x1119   :  { %v845_v27 = vpop.permute.xlu0 %844 }
0x111a   :  { %1332 = vmatmul.mubr.msk.f32.vlgmr.msra.gmra.mrb[12].mxu0 %vm57_vm1, %v845_v27 }
0x111b   :  { %1353 = vmatprep.mubr.msk.f32.mxu0 %vm1525_vm0, %v1526_v2  ;;  %1410 = vmatpush3.bf16.msra.mxu0 %v1409_v61 }
0x111c   :  { %1411 = vmatprep.subr.bf16.mxu0 %v1524_v1 }
0x111f   :  { %1413 = vmatpush3.bf16.msra.mxu0 %v1412_v63 }
0x11ed   :  { %v914_v29 = vpop.f32.mrb[12].mxu0 }
0x11ee   :  { %v918_v30 = vadd.f32 %v914_v29, %v199_v28  ;;  %v1333_v31 = vpop.f32.mrb[13].mxu0 }
0x11f0   :  { %v1179_v32 = vmul.f32 -1.442695, %v918_v30 }
0x11f2   :  { %1460 = vpow2.f32 %v1179_v32 }
0x11fc   :  { %v1461_v33 = vpop.eup %1460 }
0x11fd   :  { %v922_v34 = vadd.f32 1.0, %v1461_v33 }
0x11ff   :  { %1462 = vrcp.f32 %v922_v34 }
0x1209   :  { %v1463_v35 = vpop.eup %1462 }
0x120a   :  { %v925_v36 = vmul.f32 2.0, %v1463_v35  ;;  %v927_v2 = vmul.f32 %v1463_v35, %v834_v3 }
0x120c   :  { %v1180_v37 = vadd.f32 -1.0, %v925_v36 }
0x120e   :  { %929 = vrot.lane.b32.xlu1 %v1180_v37, %s1527_s7 }
0x1280   :  { %v930_v38 = vpop.permute.xlu1 %929 }
0x1281   :  { %v932_v39 = vmul.f32 %v1463_v35, %v930_v38 }
0x1283   :  { %934 = vrot.lane.b32.xlu0 %v932_v39, %s1528_s3 }
0x12f5   :  { %v935_v40 = vpop.permute.xlu0 %934 }
0x12f6   :  { %v937_v6 = vadd.f32 %v935_v40, %v927_v2 }
0x12f8   :  { %1464 = vtanh.f32 %v937_v6 }
0x1302   :  { %v1465_v41 = vpop.eup %1464 }
0x1303   :  { %940 = vrot.lane.b32.xlu1 %v1465_v41, %s1527_s7 }
0x1375   :  { %v941_v42 = vpop.permute.xlu1 %940 }
0x1376   :  { %v943_v43 = vmul.f32 %v1463_v35, %v941_v42 }
0x1378   :  { %947 = vrot.lane.b32.xlu0 %v943_v43, %s1528_s3 }
0x13ea   :  { %v948_v44 = vpop.permute.xlu0 %947 }
0x13eb   :  { %1343 = vmatmul.mubr.msk.f32.vlgmr.msra.gmra.mrb[8].mxu1 %vm57_vm1, %v948_v44 }
0x14be   :  { %v1017_v46 = vpop.f32.mrb[8].mxu1 }
0x14bf   :  { %v1021_v47 = vadd.f32 %v1017_v46, %v204_v45  ;;  %v1344_v48 = vpop.f32.mrb[9].mxu1 }
0x14c1   :  { %v1182_v49 = vmul.f32 -1.442695, %v1021_v47 }
0x14c3   :  { %1466 = vpow2.f32 %v1182_v49 }
0x14cd   :  { %v1467_v50 = vpop.eup %1466 }
0x14ce   :  { %v1025_v51 = vadd.f32 1.0, %v1467_v50 }
0x14d0   :  { %1468 = vrcp.f32 %v1025_v51 }
0x14da   :  { %v1469_v52 = vpop.eup %1468 }
0x14db   :  { %v1028_v53 = vmul.f32 2.0, %v1469_v52  ;;  %v1030_v57 = vmul.f32 %v1469_v52, %v937_v6 }
0x14dd   :  { %v1183_v54 = vadd.f32 -1.0, %v1028_v53 }
0x14df   :  { %1032 = vrot.lane.b32.xlu1 %v1183_v54, %s1527_s7 }
0x1551   :  { %v1033_v55 = vpop.permute.xlu1 %1032 }
0x1552   :  { %v1035_v56 = vmul.f32 %v1469_v52, %v1033_v55 }
0x1554   :  { %1037 = vrot.lane.b32.xlu0 %v1035_v56, %s1528_s3 }
0x15c6   :  { %v1038_v58 = vpop.permute.xlu0 %1037 }
0x15c7   :  { %v1040_v15 = vadd.f32 %v1038_v58, %v1030_v57 }
0x15c9   :  { %1470 = vtanh.f32 %v1040_v15 }
0x15d3   :  { %v1471_v0 = vpop.eup %1470 }
0x15d4   :  { %1043 = vrot.lane.b32.xlu1 %v1471_v0, %s1527_s7 }
0x15d8   :  { %1053 = vrot.lane.b32.xlu1 %v1040_v15, %s1529_s15 }
0x1646   :  { %v1044_v4 = vpop.permute.xlu1 %1043 }
0x1647   :  { %v1046_v7 = vmul.f32 %v1469_v52, %v1044_v4 }
0x1649   :  { %1048 = vrot.lane.b32.xlu0 %v1046_v7, %s1528_s3 }
0x164a   :  { %v1054_v8 = vpop.permute.xlu1 %1053 }
0x164b   :  { %1056 = vst.msk [vmem:[#allocation4] sm:$0xff] %vm57_vm1, %v1054_v8 }
0x16bb   :  { %v1049_v10 = vpop.permute.xlu0 %1048 }
0x16bc   :  { %1051 = vst.msk [vmem:[#allocation3] sm:$0xff] %vm57_vm1, %v1049_v10  ;;  %1354 = vmatmul.mubr.msk.f32.vlgmr.msra.gmra.mrb[14].mxu0 %vm57_vm1, %v1049_v10 }
0x178f   :  { %v1139_v1 = vpop.f32.mrb[14].mxu0 }
0x1790   :  { %v1140_v12 = vadd.f32 %v1184_v11, %v1139_v1  ;;  %v1355_v14 = vpop.f32.mrb[15].mxu0 }
0x1792   :  { %1144 = vst.msk [vmem:[%s1762_s6] sm:$0xff] %vm1143_vm3, %v1140_v12 }
0x1793   :  { %1149 = vsyncpa [#allocation7], 1 }
0x1794   :  { %1150 = vsyncpa [#allocation9], 1 }

</bundles_post_ra>
